<compile_context>
chip_gen: v6e
topology: v6e:2x2x1
jax: 0.10.0
libtpu: 0.0.40
codegen_flags: <defaults>
</compile_context>

<pallas_src>
import functools

import jax
import jax.numpy as jnp
from jax.experimental import pallas as pl
from jax.experimental.pallas import tpu as pltpu


def _round_up(x, m):
    return ((x + m - 1) // m) * m


def _vmem_budget_bytes():
    """Generation-aware VMEM budget for the double-buffered streamed blocks."""
    cap = 64 * 1024 * 1024  # conservative fallback = v7x physical VMEM per TC
    try:
        cap = int(pltpu.get_tpu_info().vmem_capacity_bytes)
    except Exception:
        pass
    # ~1/3 of physical VMEM, capped at 24 MiB (v5e/v6e: 128 MiB -> 24 MiB,
    # v7x: 64 MiB -> ~21 MiB).  The explicit vmem_limit_bytes below makes this
    # usable even where the scoped default is 16 MiB (v5e).
    return min(cap // 3, 24 * 1024 * 1024)


def _row_vmem_bytes(cols, itemsize):
    """Per-row VMEM bytes of a block after 128-lane padding."""
    return _round_up(max(cols, 128), 128) * itemsize


def _padded_vmem_bytes(rows, cols, itemsize):
    """VMEM footprint of a (rows, cols) block after (sublane, 128-lane) tiling."""
    sublane = 8 * (4 // itemsize)  # 8 for f32, 16 for bf16
    return _round_up(max(rows, 1), sublane) * _round_up(max(cols, 1), 128) * itemsize


def _choose_block_b(b_pad, h, in_itemsize, out_itemsize):
    """Pick the batch tile by BYTES, not rows: as many rows as the VMEM budget
    allows (double-buffered x block + 128-lane-padded output block), so the
    per-step DMA time dwarfs the fixed grid-step overhead on every generation."""
    row_x = _row_vmem_bytes(h, in_itemsize)
    row_o = _row_vmem_bytes(2, out_itemsize)
    budget = _vmem_budget_bytes()
    tb = (budget // (2 * (row_x + row_o))) // 8 * 8  # 2x for double buffering
    tb = max(8, tb)                                  # large-H: shrink rows, never OOM
    return int(min(tb, b_pad))


def _classifier_kernel(x_ref, w_ref, o_ref):
    # x_ref: (TB, H)   w_ref: (H, 2)   o_ref: (TB, 2)
    # Natural (M,K)@(K,N) MXU orientation -> no transpose/relayout of the big x tile.
    logits = jnp.dot(x_ref[...], w_ref[...], preferred_element_type=jnp.float32)
    # Numerically stable 2-class softmax; the reductions are over a 2-wide lane
    # axis (tiny XLU work), everything else is elementwise VPU/EUP.
    m = jnp.max(logits, axis=-1, keepdims=True)
    e = jnp.exp(logits - m)
    s = jnp.sum(e, axis=-1, keepdims=True)
    inv = pl.reciprocal(s, approx=True)   # EUP slot (otherwise idle)
    inv = inv * (2.0 - s * inv)           # one Newton step -> ~f32-exact
    o_ref[...] = (e * inv).astype(o_ref.dtype)   # single full-block store


@functools.partial(jax.jit, static_argnames=("block_b",))
def classifier_forward(x, weight, block_b=None):
    """softmax(x @ weight.T, axis=-1) via a batch-tiled, streaming Pallas TPU kernel.

    x:      (B, H) float32 or bfloat16
    weight: (2, H) float32 -- PyTorch nn.Linear(hidden_dim, 2, bias=False) layout.
    Returns (B, 2) probabilities in x.dtype (same layout as the PyTorch module).
    """
    B, H = x.shape
    assert weight.shape == (2, H)
    out_dtype = x.dtype
    in_item = jnp.dtype(x.dtype).itemsize
    out_item = jnp.dtype(out_dtype).itemsize

    # Tiny one-off flip to (H, 2) so both MXU operands sit in natural layout.
    w_t = weight.astype(x.dtype).T

    # Pad B only to the 8-row sublane granule (at most 7 rows, usually a no-op).
    b_pad = _round_up(B, 8)
    if b_pad != B:
        x = jnp.pad(x, ((0, b_pad - B), (0, 0)))

    if block_b is None:
        tb = _choose_block_b(b_pad, H, in_item, out_item)
    else:
        tb = max(8, (min(int(block_b), b_pad) // 8) * 8)

    grid = (pl.cdiv(b_pad, tb),)  # partial last block: OOB output rows are dropped

    vmem_limit = int(
        2 * _padded_vmem_bytes(tb, H, in_item)       # double-buffered x stream
        + 2 * _padded_vmem_bytes(tb, 2, out_item)    # double-buffered output block
        + _padded_vmem_bytes(H, 2, in_item)          # resident weight
        + 4 * 1024 * 1024                            # headroom for temporaries
    )

    out = pl.pallas_call(
        _classifier_kernel,
        out_shape=jax.ShapeDtypeStruct((b_pad, 2), out_dtype),
        grid=grid,
        in_specs=[
            pl.BlockSpec((tb, H), lambda i: (i, 0)),   # x: streamed / pipelined
            pl.BlockSpec((H, 2), lambda i: (0, 0)),    # weight: VMEM-resident
        ],
        out_specs=pl.BlockSpec((tb, 2), lambda i: (i, 0)),
        compiler_params=pltpu.CompilerParams(
            dimension_semantics=("parallel",),
            vmem_limit_bytes=vmem_limit,
        ),
        cost_estimate=pl.CostEstimate(
            flops=2 * b_pad * H * 2,
            transcendentals=2 * b_pad,
            bytes_accessed=b_pad * H * in_item + H * 2 * in_item + b_pad * 2 * out_item,
        ),
    )(x, w_t)

    return out[:B] if b_pad != B else out


def _reference_forward(x, weight):
    # Pure-JAX reference of the PyTorch forward (F.softmax on dim=-1 for 2-D input).
    return jax.nn.softmax(x.astype(jnp.float32) @ weight.T.astype(jnp.float32), axis=-1)


if __name__ == "__main__":
    key = jax.random.PRNGKey(0)
    k1, k2, k3, k4 = jax.random.split(key, 4)

    # --- small shapes consistent with the module (batch=8, hidden_dim=32) ----
    B, H = 8, 32
    x = jax.random.normal(k1, (B, H), dtype=jnp.float32)
    bound = 1.0 / (H ** 0.5)
    w = jax.random.uniform(k2, (2, H), jnp.float32, -bound, bound)

    out = jax.block_until_ready(classifier_forward(x, w))
    ref = _reference_forward(x, w)
    assert out.shape == (B, 2)
    assert jnp.allclose(out, ref, atol=1e-5, rtol=1e-5), (out, ref)
    assert jnp.allclose(jnp.sum(out, axis=-1), 1.0, atol=1e-5)

    # --- multi-tile grid + partial last block (B not a multiple of the tile) --
    B2, H2 = 1000, 128
    x2 = jax.random.normal(k3, (B2, H2), dtype=jnp.float32)
    bound2 = 1.0 / (H2 ** 0.5)
    w2 = jax.random.uniform(k4, (2, H2), jnp.float32, -bound2, bound2)

    out2 = jax.block_until_ready(classifier_forward(x2, w2, block_b=256))
    ref2 = _reference_forward(x2, w2)
    assert out2.shape == (B2, 2)
    assert jnp.allclose(out2, ref2, atol=1e-4, rtol=1e-4), \
        float(jnp.max(jnp.abs(out2 - ref2)))
    assert jnp.allclose(jnp.sum(out2, axis=-1), 1.0, atol=1e-5)

    # --- bf16 activations (halves the HBM read that dominates the roofline) ---
    x3 = x2.astype(jnp.bfloat16)
    out3 = jax.block_until_ready(classifier_forward(x3, w2))
    ref3 = _reference_forward(x3, w2)
    assert out3.shape == (B2, 2) and out3.dtype == jnp.bfloat16
    assert jnp.allclose(out3.astype(jnp.float32), ref3, atol=2e-2), \
        float(jnp.max(jnp.abs(out3.astype(jnp.float32) - ref3)))

    print("KERNEL_OK")
</pallas_src>

<mosaic_0001>
module attributes {stable_mosaic.version = 11 : i64} {
  func.func @_classifier_kernel(%arg0: i32, %arg1: memref<8x32xf32, #tpu.memory_space<vmem>>, %arg2: memref<32x2xf32, #tpu.memory_space<vmem>>, %arg3: memref<8x2xf32, #tpu.memory_space<vmem>>) attributes {dimension_semantics = [#tpu.dimension_semantics<parallel>], iteration_bounds = array<i64: 1>, scalar_prefetch = 0 : i64, scratch_operands = 0 : i64, tpu.core_type = #tpu.core_type<tc>, window_params = [{transform_indices = @transform_0, window_bounds = array<i64: 8, 32>}, {pipeline_mode = #tpu.pipeline_mode<synchronous>, transform_indices = @transform_1, window_bounds = array<i64: 32, 2>}, {transform_indices = @transform_2, window_bounds = array<i64: 8, 2>}]} {
    %c0 = arith.constant 0 : index
    %c0_0 = arith.constant 0 : index
    %0 = vector.load %arg1[%c0, %c0_0] : memref<8x32xf32, #tpu.memory_space<vmem>>, vector<8x32xf32>
    %c0_1 = arith.constant 0 : index
    %c0_2 = arith.constant 0 : index
    %1 = vector.load %arg2[%c0_1, %c0_2] : memref<32x2xf32, #tpu.memory_space<vmem>>, vector<32x2xf32>
    %cst = arith.constant dense<0.000000e+00> : vector<8x2xf32>
    %2 = tpu.matmul %0, %1, %cst {dimension_numbers = #tpu.dot_dimension_numbers<[1], [0], [0], [1], [0, 0, 1, 1], [], []>} : vector<8x32xf32>, vector<32x2xf32>, vector<8x2xf32> -> vector<8x2xf32>
    %cst_3 = arith.constant dense<0xFF800000> : vector<8xf32>
    %3 = vector.multi_reduction <maximumf>, %2, %cst_3 [1] : vector<8x2xf32> to vector<8xf32>
    %4 = vector.shape_cast %3 : vector<8xf32> to vector<8x1xf32>
    %5 = vector.broadcast %4 : vector<8x1xf32> to vector<8x2xf32>
    %6 = arith.subf %2, %5 : vector<8x2xf32>
    %7 = math.exp %6 : vector<8x2xf32>
    %cst_4 = arith.constant dense<0.000000e+00> : vector<8xf32>
    %8 = vector.multi_reduction <add>, %7, %cst_4 [1] : vector<8x2xf32> to vector<8xf32>
    %9 = vector.shape_cast %8 : vector<8xf32> to vector<8x1xf32>
    %10 = tpu.reciprocal %9 {approx = true} : vector<8x1xf32> -> vector<8x1xf32>
    %11 = arith.mulf %9, %10 : vector<8x1xf32>
    %cst_5 = arith.constant 2.000000e+00 : f32
    %12 = vector.broadcast %cst_5 : f32 to vector<8x1xf32>
    %13 = arith.subf %12, %11 : vector<8x1xf32>
    %14 = arith.mulf %10, %13 : vector<8x1xf32>
    %15 = vector.broadcast %14 : vector<8x1xf32> to vector<8x2xf32>
    %16 = arith.mulf %7, %15 : vector<8x2xf32>
    %c0_6 = arith.constant 0 : index
    %c0_7 = arith.constant 0 : index
    %17 = vector.load %arg3[%c0_6, %c0_7] : memref<8x2xf32, #tpu.memory_space<vmem>>, vector<8x2xf32>
    tpu.vector_store %arg3[%c0_6, %c0_7], %16 {strides = array<i32>} : memref<8x2xf32, #tpu.memory_space<vmem>>, vector<8x2xf32>,
    return
  }
  func.func @transform_0(%arg0: i32) -> (i32, i32) {
    %c0_i32 = arith.constant 0 : i32
    %c0_i32_0 = arith.constant 0 : i32
    return %arg0, %c0_i32 : i32, i32
  }
  func.func @transform_1(%arg0: i32) -> (i32, i32) {
    %c0_i32 = arith.constant 0 : i32
    %c0_i32_0 = arith.constant 0 : i32
    %c0_i32_1 = arith.constant 0 : i32
    return %c0_i32, %c0_i32_0 : i32, i32
  }
  func.func @transform_2(%arg0: i32) -> (i32, i32) {
    %c0_i32 = arith.constant 0 : i32
    %c0_i32_0 = arith.constant 0 : i32
    return %arg0, %c0_i32 : i32, i32
  }
}

</mosaic_0001>

<bundles_post_ra>
// kernel: classifier_forward.1
= control target key start
LH: loop header
LB: loop body
LE: loop exit
PB: predicated region body
PF: predicated region fallthrough
CT: control target
= control target key end

     0   :  { %v133_v0 = vmov 0.0   ;;  %vm134_vm0 = vmmov 0   ;;  %vm16_vm1 = vcmask 261120   ;;  %vm90_vm2 = vcmask 15360   ;;  %s171_s1 = inlined_call_operand.vmem [shape: f32[32,2], index: 1, kind: input, shape index: {}]   ;;  %s172_s0 = inlined_call_operand.vmem [shape: f32[8,32], index: 0, kind: input, shape index: {}]   ;;  %s173_s2 = inlined_call_operand.vmem [shape: f32[8,2], index: 2, kind: output, shape index: {}]  }
   0x1   :  { %116 = vmatprep.subr.mxu0 %v133_v0  ;;  %v15_v1 = vld [vmem:[%s171_s1 + $0x18] sm:$0xff]  ;;  %v14_v2 = vld [vmem:[%s171_s1 + $0x10] sm:$0xff]  ;;  %124 = vmatprep.mubr.msk.f32.mxu0 %vm134_vm0, %v133_v0  ;;  %v13_v3 = vld [vmem:[%s171_s1 + $0x8] sm:$0xff] }
   0x2   :  { %117 = vmatpush3.msra.mxu0 %v15_v1  ;;  %v12_v4 = vld [vmem:[%s171_s1] sm:$0xff] }
   0x3   :  { %118 = vmatprep.subr.mxu0 %v133_v0  ;;  %v11_v5 = vld [vmem:[%s172_s0] sm:$0xff] }
   0x4   :  { %119 = vmatpush3.msra.mxu0 %v14_v2 }
   0x5   :  { %120 = vmatprep.subr.mxu0 %v133_v0 }
   0x6   :  { %121 = vmatpush3.msra.mxu0 %v13_v3 }
   0x7   :  { %122 = vmatprep.subr.mxu0 %v133_v0 }
   0x8   :  { %123 = vmatpush3.msra.mxu0 %v12_v4 }
   0x9   :  { %125 = vmatmul.mubr.msk.f32.vlgmr.msra.gmra.mxu0 %vm16_vm1, %v11_v5 }
  0xc9   :  { %v86_v6 = vpop.f32.mrf.mxu0 }
  0xca   :  { %v91_v7 = vsel %vm90_vm2, %v86_v6, -inf }
  0xcb   :  { %92 = vmax.xlane.f32.xlu0 %v91_v7  ;;  %v126_v8 = vpop.f32.mrf.mxu0 }
 0x154   :  { %v93_v9 = vpop.xlane.xlu0 %92 }
 0x155   :  { %v94_v10 = vsub.f32 %v86_v6, %v93_v9 }
 0x157   :  { %v95_v11 = vmul.f32 1.442695, %v94_v10 }
 0x159   :  { %129 = vpow2.f32 %v95_v11 }
 0x166   :  { %v130_v12 = vpop.eup %129 }
 0x167   :  { %v97_v13 = vsel %vm90_vm2, %v130_v12, 0.0 }
 0x168   :  { %98 = vadd.xlane.f32.xlu0 %v97_v13 }
 0x1f1   :  { %v99_v14 = vpop.xlane.xlu0 %98 }
 0x1f2   :  { %131 = vrcp.f32 %v99_v14 }
 0x1ff   :  { %v132_v15 = vpop.eup %131 }
 0x200   :  { %v101_v16 = vmul.f32 %v132_v15, %v99_v14 }
 0x202   :  { %v102_v17 = vsub.f32 2.0, %v101_v16 }
 0x204   :  { %v103_v18 = vmul.f32 %v132_v15, %v102_v17 }
 0x206   :  { %v104_v19 = vmul.f32 %v130_v12, %v103_v18 }
 0x208   :  { %105 = vst.msk [vmem:[%s173_s2] sm:$0xff] %vm90_vm2, %v104_v19 }

</bundles_post_ra>
